<compile_context>
chip_gen: v6e
topology: v6e:2x2x1
jax: 0.10.0
libtpu: 0.0.40
codegen_flags: <defaults>
</compile_context>

<pallas_src>
import functools

import jax
import jax.numpy as jnp
from jax.experimental import pallas as pl
from jax.experimental.pallas import tpu as pltpu


_MB = 1024 * 1024


def _default_vmem_limit():
    # Generation-aware VMEM budget: ~3/4 of physical VMEM, capped at 100 MiB.
    #   v5e/v6e (128 MiB physical) -> 96 MiB ;  v7x (64 MiB physical) -> 48 MiB.
    try:
        cap = pltpu.get_tpu_info().vmem_capacity_bytes
    except Exception:
        cap = 64 * _MB
    return int(min(cap * 3 // 4, 100 * _MB))


def _largest_divisor_le(n, target, *, multiple_of=1):
    best = None
    for t in range(1, min(n, target) + 1):
        if n % t == 0 and (t % multiple_of == 0 or t == n):
            best = t
    return best if best is not None else n


def _pick_row_tile(h, wd, tc, fuse_hpool, acc_budget=512 * 1024):
    """Largest divisor of h (even when H-pool is fused) keeping the per-step
    f32 accumulator (th * wd * tc * 4 bytes) under ~acc_budget."""
    target = max(2, acc_budget // max(1, wd * tc * 4))
    best = 0
    for t in range(1, h + 1):
        if h % t:
            continue
        if fuse_hpool and t % 2:
            continue
        if t <= target and t > best:
            best = t
    return best if best else h


# ---------------------------------------------------------------------------
# conv3x3 with fused zero-pad, bias, ReLU and (optionally) the H-pool half of
# the following 2x2 maxpool.
# ---------------------------------------------------------------------------

def _conv3x3_kernel(x_ref, w_ref, b_ref, o_ref, xpad_ref, *,
                    apply_relu, fuse_hpool, stack_dx, th):
    h_img, wd, cin = x_ref.shape[1], x_ref.shape[2], x_ref.shape[3]
    tc = o_ref.shape[3]
    hstep = pl.program_id(2)

    # (Re)build the zero-padded image in the persistent VMEM scratch once per
    # (Cout-tile, image).  Only the 1-pixel halo is zeroed; the interior is
    # written exactly once (no whole-buffer zero pass).
    @pl.when(hstep == 0)
    def _():
        dt = xpad_ref.dtype
        xpad_ref[0:1, :, :] = jnp.zeros((1, wd + 2, cin), dt)
        xpad_ref[h_img + 1:h_img + 2, :, :] = jnp.zeros((1, wd + 2, cin), dt)
        xpad_ref[1:h_img + 1, 0:1, :] = jnp.zeros((h_img, 1, cin), dt)
        xpad_ref[1:h_img + 1, wd + 1:wd + 2, :] = jnp.zeros((h_img, 1, cin), dt)
        xpad_ref[1:h_img + 1, 1:wd + 1, :] = x_ref[0]

    r0 = hstep * th
    if th % 8 == 0:
        r0 = pl.multiple_of(r0, 8)

    # Value-form accumulation: MXU partial sums are chained as values and the
    # result is stored once (no f32 accumulator ref read-modify-write).
    acc = None
    if stack_dx:
        # K-stack the 3 dx taps -> 3 dots with K = 3*cin (fills the MXU for the
        # 64/128-channel layers).  Weights arrive pre-packed as (3, 3*cin, Cout).
        for dy in range(3):
            parts = [xpad_ref[pl.ds(r0 + dy, th), pl.ds(dx, wd), :]
                     for dx in range(3)]
            patch = jnp.concatenate(parts, axis=-1).reshape(th * wd, 3 * cin)
            d = jnp.dot(patch, w_ref[dy], preferred_element_type=jnp.float32)
            acc = d if acc is None else acc + d
    else:
        # cin >= 256 already fills the 256-deep MXU; keep 9 plain dots.
        for dy in range(3):
            for dx in range(3):
                patch = xpad_ref[pl.ds(r0 + dy, th), pl.ds(dx, wd), :]
                patch = patch.reshape(th * wd, cin)
                d = jnp.dot(patch, w_ref[dy, pl.ds(dx * cin, cin), :],
                            preferred_element_type=jnp.float32)
                acc = d if acc is None else acc + d

    # Epilogue: bias + ReLU + (optional) fused H-direction of the 2x2 maxpool.
    y = acc + b_ref[...]
    if apply_relu:
        y = jnp.maximum(y, 0.0)
    y = y.reshape(th, wd, tc)
    if fuse_hpool:
        y2 = y.reshape(th // 2, 2, wd, tc)      # free leading-dim split
        y = jnp.maximum(y2[:, 0], y2[:, 1])
    o_ref[0] = y.astype(o_ref.dtype)


def conv3x3_fused(x, w_packed, b, *, apply_relu, fuse_hpool, cout_tile,
                  vmem_limit):
    """3x3 same-pad conv + bias (+ ReLU) (+ fused H-pool), NHWC bf16.

    grid = (Cout tiles, batch, H-row tiles); weights are resident across the
    batch axis (one DMA per Cout tile), the padded image persists in a VMEM
    scratch across the inner H axis, and the f32 accumulator is bounded by the
    row tile.
    TODO(synk): a lane-dense (W-pair-packed) layout for the C=64 layers and a
                full in-epilogue 2x2 pool would remove the remaining W-pool pass.
    """
    n, h, wd, cin = x.shape
    cout = w_packed.shape[-1]
    tc = min(cout_tile, cout)
    while cout % tc:
        tc //= 2
    jt = cout // tc

    th = _pick_row_tile(h, wd, tc, fuse_hpool)
    ht = h // th
    th_out = th // 2 if fuse_hpool else th
    h_out = h // 2 if fuse_hpool else h

    stack_dx = cin < 256

    kernel = functools.partial(_conv3x3_kernel, apply_relu=apply_relu,
                               fuse_hpool=fuse_hpool, stack_dx=stack_dx, th=th)

    return pl.pallas_call(
        kernel,
        out_shape=jax.ShapeDtypeStruct((n, h_out, wd, cout), jnp.bfloat16),
        grid=(jt, n, ht),
        in_specs=[
            pl.BlockSpec((1, h, wd, cin), lambda j, i, hh: (i, 0, 0, 0)),
            pl.BlockSpec((3, 3 * cin, tc), lambda j, i, hh: (0, 0, j)),
            pl.BlockSpec((1, tc), lambda j, i, hh: (0, j)),
        ],
        out_specs=pl.BlockSpec((1, th_out, wd, tc),
                               lambda j, i, hh: (i, hh, 0, j)),
        scratch_shapes=[pltpu.VMEM((h + 2, wd + 2, cin), jnp.bfloat16)],
        compiler_params=pltpu.CompilerParams(
            dimension_semantics=("parallel", "parallel", "arbitrary"),
            vmem_limit_bytes=vmem_limit),
    )(x, w_packed, b)


# ---------------------------------------------------------------------------
# First conv (cin=3): wrapper-side im2col -> one K=27 matmul (+ bias + ReLU).
# Input normalization is folded exactly into this conv's weights/bias.
# ---------------------------------------------------------------------------

def _matmul_bias_act_kernel(x_ref, w_ref, b_ref, o_ref, *, apply_relu):
    y = jnp.dot(x_ref[0], w_ref[...], preferred_element_type=jnp.float32)
    y = y + b_ref[...]
    if apply_relu:
        y = jnp.maximum(y, 0.0)
    o_ref[0] = y.astype(o_ref.dtype)


def matmul_bias_act(x, w, b, *, apply_relu, vmem_limit, row_tile=2048):
    n, rows, k = x.shape
    cout = w.shape[-1]
    tr = _largest_divisor_le(rows, row_tile, multiple_of=8)
    return pl.pallas_call(
        functools.partial(_matmul_bias_act_kernel, apply_relu=apply_relu),
        out_shape=jax.ShapeDtypeStruct((n, rows, cout), jnp.bfloat16),
        grid=(n, rows // tr),
        in_specs=[pl.BlockSpec((1, tr, k), lambda i, r: (i, r, 0)),
                  pl.BlockSpec((k, cout), lambda i, r: (0, 0)),
                  pl.BlockSpec((1, cout), lambda i, r: (0, 0))],
        out_specs=pl.BlockSpec((1, tr, cout), lambda i, r: (i, r, 0)),
        compiler_params=pltpu.CompilerParams(
            dimension_semantics=("parallel", "parallel"),
            vmem_limit_bytes=vmem_limit),
    )(x, w, b)


def _im2col_3x3(x):
    n, h, w, c = x.shape
    xp = jnp.pad(x, ((0, 0), (1, 1), (1, 1), (0, 0)))
    cols = [xp[:, dy:dy + h, dx:dx + w, :] for dy in range(3) for dx in range(3)]
    return jnp.concatenate(cols, axis=-1).reshape(n, h * w, 9 * c)


# ---------------------------------------------------------------------------
# W-direction half of the 2x2 maxpool (input already H-pooled by the conv);
# lane-slice max on a wrapper-side W-pair-packed view.
# ---------------------------------------------------------------------------

def _wpool_kernel(x_ref, o_ref):
    c = o_ref.shape[3]
    x = x_ref[...]
    o_ref[...] = jnp.maximum(x[..., :c], x[..., c:]).astype(o_ref.dtype)


def wpool2(x, *, vmem_limit):
    n, h, w, c = x.shape
    w2 = w // 2
    xr = x[:, :, :2 * w2, :].reshape(n, h, w2, 2 * c)   # free row-major repack
    return pl.pallas_call(
        _wpool_kernel,
        out_shape=jax.ShapeDtypeStruct((n, h, w2, c), x.dtype),
        grid=(n,),
        in_specs=[pl.BlockSpec((1, h, w2, 2 * c), lambda i: (i, 0, 0, 0))],
        out_specs=pl.BlockSpec((1, h, w2, c), lambda i: (i, 0, 0, 0)),
        compiler_params=pltpu.CompilerParams(
            dimension_semantics=("parallel",),
            vmem_limit_bytes=vmem_limit),
    )(xr)


# ---------------------------------------------------------------------------
# Standalone 2x2 maxpool (stride 2) fallback (only used when pool fusion is
# not applicable, e.g. a feature is requested between conv/ReLU and the pool).
# ---------------------------------------------------------------------------

def _maxpool_kernel(x_ref, o_ref):
    h2, w2, c = o_ref.shape[1], o_ref.shape[2], o_ref.shape[3]
    x = x_ref[...]
    xw = jnp.maximum(x[..., :c], x[..., c:])
    xh = xw.reshape(1, h2, 2, w2, c)
    o_ref[...] = jnp.max(xh, axis=2).astype(o_ref.dtype)


def maxpool2x2(x, *, vmem_limit):
    n, h, wd, c = x.shape
    h2, w2 = h // 2, wd // 2
    x = x[:, :2 * h2, :2 * w2, :]
    xr = x.reshape(n, 2 * h2, w2, 2 * c)
    return pl.pallas_call(
        _maxpool_kernel,
        out_shape=jax.ShapeDtypeStruct((n, h2, w2, c), x.dtype),
        grid=(n,),
        in_specs=[pl.BlockSpec((1, 2 * h2, w2, 2 * c), lambda i: (i, 0, 0, 0))],
        out_specs=pl.BlockSpec((1, h2, w2, c), lambda i: (i, 0, 0, 0)),
        compiler_params=pltpu.CompilerParams(
            dimension_semantics=("parallel",),
            vmem_limit_bytes=vmem_limit),
    )(xr)


# ---------------------------------------------------------------------------
# MSE between the two halves of the concatenated batch (gridded reduction).
# ---------------------------------------------------------------------------

def _mse_accum_kernel(a_ref, b_ref, o_ref):
    @pl.when(jnp.logical_and(pl.program_id(0) == 0, pl.program_id(1) == 0))
    def _():
        o_ref[0, 0] = jnp.float32(0.0)
    d = a_ref[...].astype(jnp.float32) - b_ref[...].astype(jnp.float32)
    o_ref[0, 0] += jnp.sum(d * d)


def mse_between_halves(feats, n, *, vmem_limit):
    """mean((feats[:n] - feats[n:])**2); halves addressed purely via index maps,
    channel-tiled for more grid steps / DMA-compute overlap."""
    _, h, wd, c = feats.shape
    tc = 128 if c % 128 == 0 else c
    out = pl.pallas_call(
        _mse_accum_kernel,
        out_shape=jax.ShapeDtypeStruct((1, 1), jnp.float32),
        grid=(n, c // tc),
        in_specs=[pl.BlockSpec((1, h, wd, tc), lambda i, k: (i, 0, 0, k)),
                  pl.BlockSpec((1, h, wd, tc), lambda i, k: (i + n, 0, 0, k))],
        out_specs=pl.BlockSpec((1, 1), lambda i, k: (0, 0),
                               memory_space=pltpu.MemorySpace.SMEM),
        compiler_params=pltpu.CompilerParams(
            dimension_semantics=("arbitrary", "arbitrary"),
            vmem_limit_bytes=vmem_limit),
    )(feats, feats)
    return out[0, 0] / jnp.float32(n * h * wd * c)


# ---------------------------------------------------------------------------
# VGG16 feature extractor (torchvision module indexing) + PerceptualLoss
# ---------------------------------------------------------------------------

_VGG16_CFG = [64, 64, 'M', 128, 128, 'M', 256, 256, 256, 'M',
              512, 512, 512, 'M', 512, 512, 512, 'M']


def _vgg16_modules(num_layers):
    modules = []
    cin = 3
    for v in _VGG16_CFG:
        if v == 'M':
            modules.append(('pool',))
        else:
            modules.append(('conv', cin, v))
            modules.append(('relu',))
            cin = v
    return modules[:num_layers]


def _init_vgg_params(modules, key, use_input_norm, mean, std):
    params = {}
    for idx, mod in enumerate(modules):
        if mod[0] != 'conv':
            continue
        _, cin, cout = mod
        key, wk = jax.random.split(key)
        w = jax.random.normal(wk, (3, 3, cin, cout), jnp.float32)
        w = w * jnp.sqrt(2.0 / (cin * 9))
        b = jnp.zeros((cout,), jnp.float32)
        if idx == 0:
            if use_input_norm:
                # Fold (x - mean)/std exactly into the first conv (conv is linear).
                inv_std = 1.0 / std
                b = b - jnp.einsum('yxco,c->o', w, mean * inv_std)
                w = w * inv_std[None, None, :, None]
            wp = w.reshape(9 * cin, cout).astype(jnp.bfloat16)      # im2col layout
        else:
            wp = w.reshape(3, 3 * cin, cout).astype(jnp.bfloat16)   # dx-stacked K
        params[idx] = (wp, b.reshape(1, cout))
    return params


class PerceptualLossPallas:
    def __init__(self, layer_weights=None, use_input_norm=True,
                 perceptual_weight=0.01, norm_img=False,
                 key=jax.random.PRNGKey(1234)):
        self.layer_weights = layer_weights or {'21': 1.0}
        self.use_input_norm = use_input_norm
        self.perceptual_weight = perceptual_weight
        self.norm_img = norm_img
        self.vmem_limit = _default_vmem_limit()
        self.cout_tile = 512 if self.vmem_limit >= 80 * _MB else 256
        num_layers = max(map(int, self.layer_weights.keys())) + 1
        self.modules = _vgg16_modules(num_layers)
        mean = jnp.array([0.485, 0.456, 0.406], jnp.float32)
        std = jnp.array([0.229, 0.224, 0.225], jnp.float32)
        self.params = _init_vgg_params(self.modules, key, use_input_norm,
                                       mean, std)

    def _features(self, x):
        feats = {}
        needed = set(self.layer_weights.keys())
        mods = self.modules
        i = 0
        while i < len(mods):
            m = mods[i]
            if m[0] == 'conv':
                _, cin, cout = m
                w, b = self.params[i]
                relu_next = i + 1 < len(mods) and mods[i + 1][0] == 'relu'
                fuse_relu = relu_next and str(i) not in needed
                pool_next = (fuse_relu and i + 2 < len(mods)
                             and mods[i + 2][0] == 'pool'
                             and str(i + 1) not in needed)
                h_cur, w_cur = x.shape[1], x.shape[2]
                fuse_pool = (pool_next and cin != 3
                             and h_cur % 2 == 0 and w_cur % 2 == 0)
                if cin == 3:
                    n2, hh, ww, _ = x.shape
                    xi = _im2col_3x3(x)
                    y = matmul_bias_act(xi, w, b, apply_relu=fuse_relu,
                                        vmem_limit=self.vmem_limit)
                    x = y.reshape(n2, hh, ww, cout)
                else:
                    x = conv3x3_fused(x, w, b, apply_relu=fuse_relu,
                                      fuse_hpool=fuse_pool,
                                      cout_tile=self.cout_tile,
                                      vmem_limit=self.vmem_limit)
                if fuse_pool:
                    # conv produced the ReLU'd, H-pooled tensor; finish the pool.
                    x = wpool2(x, vmem_limit=self.vmem_limit)
                    i += 3
                    if str(i - 1) in needed:     # the pool module's output
                        feats[str(i - 1)] = x
                else:
                    if str(i) in needed:
                        feats[str(i)] = x
                    i += 1
                    if fuse_relu:
                        if str(i) in needed:
                            feats[str(i)] = x
                        i += 1
            elif m[0] == 'relu':
                # TODO(synk): only reached if a pre-ReLU conv feature was
                # requested (not the default config); plain-JAX fallback.
                x = jnp.maximum(x, 0)
                if str(i) in needed:
                    feats[str(i)] = x
                i += 1
            else:  # pool that could not be fused into the preceding conv
                x = maxpool2x2(x, vmem_limit=self.vmem_limit)
                if str(i) in needed:
                    feats[str(i)] = x
                i += 1
        return feats

    def __call__(self, x_nchw, gt_nchw):
        x = x_nchw.astype(jnp.float32)
        gt = gt_nchw.astype(jnp.float32)
        if self.norm_img:
            x = (x + 1.0) * 0.5
            gt = (gt + 1.0) * 0.5
        n = x.shape[0]
        # Concatenate x and gt -> one feature pass; NCHW -> NHWC bf16 (glue).
        xg = jnp.concatenate([x, gt], axis=0)
        xg = jnp.transpose(xg, (0, 2, 3, 1)).astype(jnp.bfloat16)
        feats = self._features(xg)
        if self.perceptual_weight > 0:
            loss = jnp.float32(0.0)
            for k in feats:
                loss = loss + (mse_between_halves(feats[k], n,
                                                  vmem_limit=self.vmem_limit)
                               * self.layer_weights[k])
            return loss * self.perceptual_weight
        return None  # mirrors the PyTorch None path when perceptual_weight == 0


if __name__ == "__main__":
    key = jax.random.PRNGKey(0)
    kx, kg = jax.random.split(key)
    # Small image-like inputs in [0, 1); NCHW like the PyTorch module expects.
    x = jax.random.uniform(kx, (2, 3, 16, 16), jnp.float32)
    gt = jax.random.uniform(kg, (2, 3, 16, 16), jnp.float32)

    loss_mod = PerceptualLossPallas()
    loss = loss_mod(x, gt)
    loss = jax.block_until_ready(loss)
    assert jnp.isfinite(loss), f"non-finite loss: {loss}"
    print("KERNEL_OK")
</pallas_src>

<mosaic_0001>
module attributes {stable_mosaic.version = 11 : i64} {
  func.func @_matmul_bias_act_kernel(%arg0: i32, %arg1: i32, %arg2: memref<1x256x27xbf16, #tpu.memory_space<vmem>>, %arg3: memref<27x64xbf16, #tpu.memory_space<vmem>>, %arg4: memref<1x64xf32, #tpu.memory_space<vmem>>, %arg5: memref<1x256x64xbf16, #tpu.memory_space<vmem>>) attributes {dimension_semantics = [#tpu.dimension_semantics<parallel>, #tpu.dimension_semantics<parallel>], iteration_bounds = array<i64: 4, 1>, scalar_prefetch = 0 : i64, scratch_operands = 0 : i64, tpu.core_type = #tpu.core_type<tc>, window_params = [{transform_indices = @transform_0, window_bounds = array<i64: 1, 256, 27>}, {pipeline_mode = #tpu.pipeline_mode<synchronous>, transform_indices = @transform_1, window_bounds = array<i64: 27, 64>}, {pipeline_mode = #tpu.pipeline_mode<synchronous>, transform_indices = @transform_2, window_bounds = array<i64: 1, 64>}, {transform_indices = @transform_3, window_bounds = array<i64: 1, 256, 64>}]} {
    %c0 = arith.constant 0 : index
    %c0_0 = arith.constant 0 : index
    %c0_1 = arith.constant 0 : index
    %0 = vector.load %arg2[%c0, %c0_0, %c0_1] : memref<1x256x27xbf16, #tpu.memory_space<vmem>>, vector<1x256x27xbf16>
    %1 = vector.shape_cast %0 : vector<1x256x27xbf16> to vector<256x27xbf16>
    %c0_2 = arith.constant 0 : index
    %c0_3 = arith.constant 0 : index
    %2 = vector.load %arg3[%c0_2, %c0_3] : memref<27x64xbf16, #tpu.memory_space<vmem>>, vector<27x64xbf16>
    %cst = arith.constant dense<0.000000e+00> : vector<256x64xf32>
    %3 = tpu.matmul %1, %2, %cst {dimension_numbers = #tpu.dot_dimension_numbers<[1], [0], [0], [1], [0, 0, 1, 1], [], []>} : vector<256x27xbf16>, vector<27x64xbf16>, vector<256x64xf32> -> vector<256x64xf32>
    %c0_4 = arith.constant 0 : index
    %c0_5 = arith.constant 0 : index
    %4 = vector.load %arg4[%c0_4, %c0_5] : memref<1x64xf32, #tpu.memory_space<vmem>>, vector<1x64xf32>
    %5 = vector.broadcast %4 : vector<1x64xf32> to vector<256x64xf32>
    %6 = arith.addf %3, %5 : vector<256x64xf32>
    %cst_6 = arith.constant 0.000000e+00 : f32
    %7 = vector.broadcast %cst_6 : f32 to vector<256x64xf32>
    %8 = arith.maximumf %6, %7 : vector<256x64xf32>
    %9 = arith.truncf %8 : vector<256x64xf32> to vector<256x64xbf16>
    %c0_7 = arith.constant 0 : index
    %c0_8 = arith.constant 0 : index
    %c0_9 = arith.constant 0 : index
    %10 = vector.load %arg5[%c0_7, %c0_8, %c0_9] : memref<1x256x64xbf16, #tpu.memory_space<vmem>>, vector<1x256x64xbf16>
    %11 = vector.shape_cast %10 : vector<1x256x64xbf16> to vector<256x64xbf16>
    %12 = vector.shape_cast %9 : vector<256x64xbf16> to vector<1x256x64xbf16>
    tpu.vector_store %arg5[%c0_7, %c0_8, %c0_9], %12 {strides = array<i32>} : memref<1x256x64xbf16, #tpu.memory_space<vmem>>, vector<1x256x64xbf16>,
    return
  }
  func.func @transform_0(%arg0: i32, %arg1: i32) -> (i32, i32, i32) {
    %c0_i32 = arith.constant 0 : i32
    %c0_i32_0 = arith.constant 0 : i32
    return %arg0, %arg1, %c0_i32 : i32, i32, i32
  }
  func.func @transform_1(%arg0: i32, %arg1: i32) -> (i32, i32) {
    %c0_i32 = arith.constant 0 : i32
    %c0_i32_0 = arith.constant 0 : i32
    %c0_i32_1 = arith.constant 0 : i32
    return %c0_i32, %c0_i32_0 : i32, i32
  }
  func.func @transform_2(%arg0: i32, %arg1: i32) -> (i32, i32) {
    %c0_i32 = arith.constant 0 : i32
    %c0_i32_0 = arith.constant 0 : i32
    %c0_i32_1 = arith.constant 0 : i32
    return %c0_i32, %c0_i32_0 : i32, i32
  }
  func.func @transform_3(%arg0: i32, %arg1: i32) -> (i32, i32, i32) {
    %c0_i32 = arith.constant 0 : i32
    %c0_i32_0 = arith.constant 0 : i32
    return %arg0, %arg1, %c0_i32 : i32, i32, i32
  }
}

</mosaic_0001>

<bundles_post_ra>
// kernel: tpu_custom_call.1
= control target key start
LH: loop header
LB: loop body
LE: loop exit
PB: predicated region body
PF: predicated region fallthrough
CT: control target
= control target key end

     0   :  { %s1100_s12 = smov 0   ;;  %s1102_s13 = smov 0   ;;  %s1283_s0 = inlined_call_operand.vmem [shape: bf16[4,256,27], index: 0, kind: input, shape index: {}]   ;;  %s1284_s1 = inlined_call_operand.vmem [shape: bf16[27,64], index: 1, kind: input, shape index: {}]   ;;  %s1285_s2 = inlined_call_operand.vmem [shape: f32[1,64], index: 2, kind: input, shape index: {}]   ;;  %s1286_s3 = inlined_call_operand.vmem [shape: bf16[4,256,64], index: 3, kind: output, shape index: {}]  }
   0x1   :  { %s1104_s14 = smov 0  }
   0x2 LB: > { %s25_s15 = sadd.s32 1, %s1073_s13  ;;  %p846_p0 = scmp.ge.s32.totalorder %s1077_s14, 1  ;;  %s1077_s14 = sphi %s1104_s14, %s13_s14   ;;  %s1073_s13 = sphi %s1102_s13, %s1288_s13   ;;  %s1069_s12 = sphi %s1100_s12, %s1287_s12  }
   0x3   : > { %p27_p1 = scmp.ge.s32.totalorder %s25_s15, 4  ;;  %p158_p2 = scmp.lt.s32.totalorder %s1077_s14, 5 }
   0x5   : > { %s1290_s15 = smov (%p27_p1, %s25_s15), 0  ;;  %p159_p3 = pnand %p846_p0, %p158_p2 }
   0x6   : > { %p191_p4 = scmp.lt.s32.totalorder (!%p159_p3), %s1069_s12, 3 }
   0x7   : > { %162 = sbr.rel (%p159_p3) target bundleno = 256 (0x100), region = 32 }
   0xc   : > { %v1037_v0 = vld [vmem:[%s1284_s1 + $0x8] sm:$0x3f]   ;;  %vm394_vm0 = vcmask 1044480   ;;  %vm395_vm1 = vcmask 1045504   ;;  %v1079_v1 = vmov 65535   ;;  %v1038_v5 = vld [vmem:[%s1284_s1] sm:$0xff]  }
   0xd   : > { %v396_v2 = vsel %vm394_vm0, 4294967295, %v1079_v1  ;;  %s1292_s12 = smov (!%p191_p4, %s1069_s12), 3  ;;  %vm345_vm2 = vcmask 220160   ;;  %v1169_v22 = vld [vmem:[%s1285_s2] ss:$0 sm:$0xff]  ;;  %vm722_vm3 = vcmask 519168  }
   0xe   : > { %v397_v3 = vsel %vm395_vm1, %v396_v2, 0  ;;  %s920_s20 = sshll.u32 %s1292_s12, 7 }
   0xf   : > { %v399_v4 = vand.u32 %v1037_v0, %v397_v3  ;;  %s1132_s23 = scalar_lea.vmem %s1283_s0, %s920_s20  ;;  %s1180_s28 = scalar_lea.vmem %s1286_s3, %s920_s20 }
  0x10   : > { %v1039_v6 = vld [vmem:[%s1132_s23] sm:$0xff]   ;;  %v1041_v8 = vld [vmem:[%s1132_s23 + $0x8] sm:$0xff]   ;;  %v1043_v10 = vld [vmem:[%s1132_s23 + $0x10] sm:$0xff]  }
  0x11   : > { %972 = vmatprep.subr.bf16.mxu0 %v399_v4  ;;  %1008 = vmatprep.subr.bf16.mxu1 %v399_v4  ;;  %v1040_v7 = vld [vmem:[%s1132_s23 + $0x40] sm:$0xff]   ;;  %v1042_v9 = vld [vmem:[%s1132_s23 + $0x48] sm:$0xff]   ;;  %v1044_v11 = vld [vmem:[%s1132_s23 + $0x50] sm:$0xff]  }
  0x12   : > { %973 = vmatpush3.bf16.msra.mxu0 %v399_v4  ;;  %1010 = vmatpush3.bf16.msra.mxu1 %v399_v4  ;;  %v1045_v12 = vld [vmem:[%s1132_s23 + $0x18] sm:$0xff]   ;;  %v1047_v14 = vld [vmem:[%s1132_s23 + $0x20] sm:$0xff]   ;;  %v1049_v16 = vld [vmem:[%s1132_s23 + $0x28] sm:$0xff]  }
  0x13   : > { %974 = vmatprep.subr.bf16.mxu0 %v1038_v5  ;;  %1009 = vmatprep.subr.bf16.mxu1 %v1038_v5  ;;  %v1046_v13 = vld [vmem:[%s1132_s23 + $0x58] sm:$0xff]   ;;  %v1048_v15 = vld [vmem:[%s1132_s23 + $0x60] sm:$0xff]   ;;  %v1050_v17 = vld [vmem:[%s1132_s23 + $0x68] sm:$0xff]  }
  0x14   : > { %976 = vmatprep.mubr.msk.bf16.mxu0 %vm345_vm2, %v1039_v6  ;;  %992 = vmatprep.mubr.msk.bf16.mxu1 %vm345_vm2, %v1040_v7  ;;  %v1051_v18 = vld [vmem:[%s1132_s23 + $0x30] sm:$0xff]   ;;  %v1053_v20 = vld [vmem:[%s1132_s23 + $0x38] sm:$0xff]  }
  0x15   : > { %v1052_v19 = vld [vmem:[%s1132_s23 + $0x70] sm:$0xff]   ;;  %v1054_v21 = vld [vmem:[%s1132_s23 + $0x78] sm:$0xff]  }
  0x16   : > { %975 = vmatpush3.bf16.msra.mxu0 %v1038_v5  ;;  %1011 = vmatpush3.bf16.msra.mxu1 %v1038_v5 }
  0x19   : > { %977 = vmatmul.mubr.msk.bf16.vlgmr.msra.gmra.mxu0 %vm345_vm2, %v1041_v8  ;;  %993 = vmatmul.mubr.msk.bf16.vlgmr.msra.gmra.mxu1 %vm345_vm2, %v1042_v9 }
  0x1a   : > { %980 = vmatprep.mubr.msk.bf16.mxu0 %vm345_vm2, %v1043_v10  ;;  %996 = vmatprep.mubr.msk.bf16.mxu1 %vm345_vm2, %v1044_v11 }
  0x21   : > { %981 = vmatmul.mubr.msk.bf16.gmra.mxu0 %vm345_vm2, %v1045_v12  ;;  %997 = vmatmul.mubr.msk.bf16.gmra.mxu1 %vm345_vm2, %v1046_v13 }
  0x22   : > { %984 = vmatprep.mubr.msk.bf16.mxu0 %vm345_vm2, %v1047_v14  ;;  %1000 = vmatprep.mubr.msk.bf16.mxu1 %vm345_vm2, %v1048_v15 }
  0x29   : > { %985 = vmatmul.mubr.msk.bf16.gmra.mxu0 %vm345_vm2, %v1049_v16  ;;  %1001 = vmatmul.mubr.msk.bf16.gmra.mxu1 %vm345_vm2, %v1050_v17 }
  0x2a   : > { %988 = vmatprep.mubr.msk.bf16.mxu0 %vm345_vm2, %v1051_v18  ;;  %1004 = vmatprep.mubr.msk.bf16.mxu1 %vm345_vm2, %v1052_v19 }
  0x31   : > { %989 = vmatmul.mubr.msk.bf16.gmra.mxu0 %vm345_vm2, %v1053_v20  ;;  %1005 = vmatmul.mubr.msk.bf16.gmra.mxu1 %vm345_vm2, %v1054_v21 }
  0xd9   : > { %v978_v23 = vpop.f32.mrf.mxu0  ;;  %v994_v24 = vpop.f32.mrf.mxu1 }
  0xda   : > { %v444_v25 = vadd.f32 %v978_v23, %v1169_v22  ;;  %v508_v26 = vadd.f32 %v994_v24, %v1169_v22 }
  0xdb   : > { %v435_v27 = vpop.f32.mrf.mxu0  ;;  %v499_v28 = vpop.f32.mrf.mxu1 }
  0xdc   : > { %v564_v29 = vmax.f32 %v444_v25, 0.0  ;;  %v580_v30 = vmax.f32 %v508_v26, 0.0  ;;  %v436_v31 = vadd.f32 %v1169_v22, %v435_v27  ;;  %v500_v32 = vadd.f32 %v1169_v22, %v499_v28 }
  0xdd   : > { %v979_v33 = vpop.f32.mrf.mxu0  ;;  %v995_v34 = vpop.f32.mrf.mxu1 }
  0xde   : > { %v924_v35 = vpack.c.bf16 %v564_v29, %v564_v29  ;;  %v940_v36 = vpack.c.bf16 %v580_v30, %v580_v30  ;;  %v562_v37 = vmax.f32 %v436_v31, 0.0  ;;  %v578_v38 = vmax.f32 %v500_v32, 0.0 }
  0xdf   : > { %v447_v39 = vadd.f32 %v979_v33, %v1169_v22  ;;  %v511_v40 = vadd.f32 %v995_v34, %v1169_v22  ;;  %v438_v41 = vpop.f32.mrf.mxu0  ;;  %v502_v42 = vpop.f32.mrf.mxu1 }
  0xe0   : > { %725 = vst.msk [vmem:[%s1180_s28 + $0x8] sm:$0xf] %vm722_vm3, %v924_v35  ;;  %741 = vst.msk [vmem:[%s1180_s28 + $0x48] sm:$0xf] %vm722_vm3, %v940_v36  ;;  %v922_v43 = vpack.c.bf16 %v562_v37, %v562_v37  ;;  %v938_v44 = vpack.c.bf16 %v578_v38, %v578_v38  ;;  %v439_v45 = vadd.f32 %v1169_v22, %v438_v41 }
  0xe1   : > { %v503_v46 = vadd.f32 %v1169_v22, %v502_v42  ;;  %v565_v47 = vmax.f32 %v447_v39, 0.0  ;;  %v581_v48 = vmax.f32 %v511_v40, 0.0  ;;  %v982_v49 = vpop.f32.mrf.mxu0  ;;  %v998_v50 = vpop.f32.mrf.mxu1 }
  0xe2   : > { %723 = vst.msk [vmem:[%s1180_s28] sm:$0xf] %vm722_vm3, %v922_v43  ;;  %739 = vst.msk [vmem:[%s1180_s28 + $0x40] sm:$0xf] %vm722_vm3, %v938_v44  ;;  %v563_v51 = vmax.f32 %v439_v45, 0.0  ;;  %v460_v53 = vadd.f32 %v982_v49, %v1169_v22  ;;  %v524_v54 = vadd.f32 %v998_v50, %v1169_v22 }
  0xe3   : > { %v579_v52 = vmax.f32 %v503_v46, 0.0  ;;  %v925_v55 = vpack.c.bf16 %v565_v47, %v565_v47  ;;  %v941_v56 = vpack.c.bf16 %v581_v48, %v581_v48  ;;  %v451_v57 = vpop.f32.mrf.mxu0  ;;  %v515_v58 = vpop.f32.mrf.mxu1 }
  0xe4   : > { %v923_v59 = vpack.c.bf16 %v563_v51, %v563_v51  ;;  %v568_v61 = vmax.f32 %v460_v53, 0.0  ;;  %v584_v62 = vmax.f32 %v524_v54, 0.0  ;;  %v452_v63 = vadd.f32 %v1169_v22, %v451_v57 }
  0xe5   : > { %v939_v60 = vpack.c.bf16 %v579_v52, %v579_v52  ;;  %726 = vst.msk [vmem:[%s1180_s28 + $0xc] sm:$0xf] %vm722_vm3, %v925_v55  ;;  %742 = vst.msk [vmem:[%s1180_s28 + $0x4c] sm:$0xf] %vm722_vm3, %v941_v56  ;;  %v516_v0 = vadd.f32 %v1169_v22, %v515_v58  ;;  %v983_v1 = vpop.f32.mrf.mxu0  ;;  %v999_v2 = vpop.f32.mrf.mxu1 }
  0xe6   : > { %724 = vst.msk [vmem:[%s1180_s28 + $0x4] sm:$0xf] %vm722_vm3, %v923_v59  ;;  %v928_v3 = vpack.c.bf16 %v568_v61, %v568_v61  ;;  %v944_v4 = vpack.c.bf16 %v584_v62, %v584_v62  ;;  %v463_v5 = vadd.f32 %v983_v1, %v1169_v22  ;;  %v527_v6 = vadd.f32 %v999_v2, %v1169_v22 }
  0xe7   : > { %740 = vst.msk [vmem:[%s1180_s28 + $0x44] sm:$0xf] %vm722_vm3, %v939_v60  ;;  %v566_v7 = vmax.f32 %v452_v63, 0.0  ;;  %v582_v8 = vmax.f32 %v516_v0, 0.0  ;;  %v454_v9 = vpop.f32.mrf.mxu0  ;;  %v518_v10 = vpop.f32.mrf.mxu1 }
  0xe8   : > { %729 = vst.msk [vmem:[%s1180_s28 + $0x18] sm:$0xf] %vm722_vm3, %v928_v3  ;;  %745 = vst.msk [vmem:[%s1180_s28 + $0x58] sm:$0xf] %vm722_vm3, %v944_v4  ;;  %v569_v11 = vmax.f32 %v463_v5, 0.0  ;;  %v585_v12 = vmax.f32 %v527_v6, 0.0  ;;  %v455_v13 = vadd.f32 %v1169_v22, %v454_v9  ;;  %v519_v14 = vadd.f32 %v1169_v22, %v518_v10 }
  0xe9   : > { %v926_v15 = vpack.c.bf16 %v566_v7, %v566_v7  ;;  %v942_v16 = vpack.c.bf16 %v582_v8, %v582_v8  ;;  %v986_v17 = vpop.f32.mrf.mxu0  ;;  %v1002_v18 = vpop.f32.mrf.mxu1 }
  0xea   : > { %v929_v19 = vpack.c.bf16 %v569_v11, %v569_v11  ;;  %v945_v20 = vpack.c.bf16 %v585_v12, %v585_v12  ;;  %v567_v21 = vmax.f32 %v455_v13, 0.0  ;;  %v583_v23 = vmax.f32 %v519_v14, 0.0 }
  0xeb   : > { %727 = vst.msk [vmem:[%s1180_s28 + $0x10] sm:$0xf] %vm722_vm3, %v926_v15  ;;  %743 = vst.msk [vmem:[%s1180_s28 + $0x50] sm:$0xf] %vm722_vm3, %v942_v16  ;;  %v476_v24 = vadd.f32 %v986_v17, %v1169_v22  ;;  %v540_v25 = vadd.f32 %v1002_v18, %v1169_v22  ;;  %v467_v26 = vpop.f32.mrf.mxu0  ;;  %v531_v27 = vpop.f32.mrf.mxu1 }
  0xec   : > { %730 = vst.msk [vmem:[%s1180_s28 + $0x1c] sm:$0xf] %vm722_vm3, %v929_v19  ;;  %746 = vst.msk [vmem:[%s1180_s28 + $0x5c] sm:$0xf] %vm722_vm3, %v945_v20  ;;  %v927_v28 = vpack.c.bf16 %v567_v21, %v567_v21  ;;  %v943_v29 = vpack.c.bf16 %v583_v23, %v583_v23  ;;  %v468_v30 = vadd.f32 %v1169_v22, %v467_v26 }
  0xed   : > { %v532_v31 = vadd.f32 %v1169_v22, %v531_v27  ;;  %v572_v32 = vmax.f32 %v476_v24, 0.0  ;;  %v588_v33 = vmax.f32 %v540_v25, 0.0  ;;  %v987_v34 = vpop.f32.mrf.mxu0  ;;  %v1003_v35 = vpop.f32.mrf.mxu1 }
  0xee   : > { %728 = vst.msk [vmem:[%s1180_s28 + $0x14] sm:$0xf] %vm722_vm3, %v927_v28  ;;  %744 = vst.msk [vmem:[%s1180_s28 + $0x54] sm:$0xf] %vm722_vm3, %v943_v29  ;;  %v570_v36 = vmax.f32 %v468_v30, 0.0  ;;  %v479_v38 = vadd.f32 %v987_v34, %v1169_v22  ;;  %v543_v39 = vadd.f32 %v1003_v35, %v1169_v22 }
  0xef   : > { %v586_v37 = vmax.f32 %v532_v31, 0.0  ;;  %v932_v40 = vpack.c.bf16 %v572_v32, %v572_v32  ;;  %v948_v41 = vpack.c.bf16 %v588_v33, %v588_v33  ;;  %v470_v42 = vpop.f32.mrf.mxu0  ;;  %v534_v43 = vpop.f32.mrf.mxu1 }
  0xf0   : > { %v930_v44 = vpack.c.bf16 %v570_v36, %v570_v36  ;;  %v573_v46 = vmax.f32 %v479_v38, 0.0  ;;  %v589_v47 = vmax.f32 %v543_v39, 0.0  ;;  %v471_v48 = vadd.f32 %v1169_v22, %v470_v42 }
  0xf1   : > { %v946_v45 = vpack.c.bf16 %v586_v37, %v586_v37  ;;  %733 = vst.msk [vmem:[%s1180_s28 + $0x28] sm:$0xf] %vm722_vm3, %v932_v40  ;;  %749 = vst.msk [vmem:[%s1180_s28 + $0x68] sm:$0xf] %vm722_vm3, %v948_v41  ;;  %v535_v49 = vadd.f32 %v1169_v22, %v534_v43  ;;  %v990_v50 = vpop.f32.mrf.mxu0  ;;  %v1006_v51 = vpop.f32.mrf.mxu1 }
  0xf2   : > { %731 = vst.msk [vmem:[%s1180_s28 + $0x20] sm:$0xf] %vm722_vm3, %v930_v44  ;;  %v933_v52 = vpack.c.bf16 %v573_v46, %v573_v46  ;;  %v949_v53 = vpack.c.bf16 %v589_v47, %v589_v47  ;;  %v492_v54 = vadd.f32 %v990_v50, %v1169_v22  ;;  %v556_v55 = vadd.f32 %v1006_v51, %v1169_v22 }
  0xf3   : > { %747 = vst.msk [vmem:[%s1180_s28 + $0x60] sm:$0xf] %vm722_vm3, %v946_v45  ;;  %v571_v56 = vmax.f32 %v471_v48, 0.0  ;;  %v587_v57 = vmax.f32 %v535_v49, 0.0  ;;  %v483_v58 = vpop.f32.mrf.mxu0  ;;  %v547_v59 = vpop.f32.mrf.mxu1 }
  0xf4   : > { %734 = vst.msk [vmem:[%s1180_s28 + $0x2c] sm:$0xf] %vm722_vm3, %v933_v52  ;;  %750 = vst.msk [vmem:[%s1180_s28 + $0x6c] sm:$0xf] %vm722_vm3, %v949_v53  ;;  %v576_v60 = vmax.f32 %v492_v54, 0.0  ;;  %v592_v61 = vmax.f32 %v556_v55, 0.0  ;;  %v484_v62 = vadd.f32 %v1169_v22, %v483_v58  ;;  %v548_v63 = vadd.f32 %v1169_v22, %v547_v59 }
  0xf5   : > { %v931_v0 = vpack.c.bf16 %v571_v56, %v571_v56  ;;  %v947_v1 = vpack.c.bf16 %v587_v57, %v587_v57  ;;  %v991_v2 = vpop.f32.mrf.mxu0  ;;  %v1007_v3 = vpop.f32.mrf.mxu1 }
  0xf6   : > { %v936_v4 = vpack.c.bf16 %v576_v60, %v576_v60  ;;  %v952_v5 = vpack.c.bf16 %v592_v61, %v592_v61  ;;  %v574_v6 = vmax.f32 %v484_v62, 0.0  ;;  %v590_v7 = vmax.f32 %v548_v63, 0.0 }
  0xf7   : > { %732 = vst.msk [vmem:[%s1180_s28 + $0x24] sm:$0xf] %vm722_vm3, %v931_v0  ;;  %748 = vst.msk [vmem:[%s1180_s28 + $0x64] sm:$0xf] %vm722_vm3, %v947_v1  ;;  %v495_v8 = vadd.f32 %v991_v2, %v1169_v22  ;;  %v559_v9 = vadd.f32 %v1007_v3, %v1169_v22  ;;  %v486_v10 = vpop.f32.mrf.mxu0  ;;  %v550_v11 = vpop.f32.mrf.mxu1 }
  0xf8   : > { %737 = vst.msk [vmem:[%s1180_s28 + $0x38] sm:$0xf] %vm722_vm3, %v936_v4  ;;  %753 = vst.msk [vmem:[%s1180_s28 + $0x78] sm:$0xf] %vm722_vm3, %v952_v5  ;;  %v934_v12 = vpack.c.bf16 %v574_v6, %v574_v6  ;;  %v950_v13 = vpack.c.bf16 %v590_v7, %v590_v7  ;;  %v487_v14 = vadd.f32 %v1169_v22, %v486_v10 }
  0xf9   : > { %v551_v15 = vadd.f32 %v1169_v22, %v550_v11  ;;  %v577_v16 = vmax.f32 %v495_v8, 0.0  ;;  %v593_v17 = vmax.f32 %v559_v9, 0.0 }
  0xfa   : > { %735 = vst.msk [vmem:[%s1180_s28 + $0x30] sm:$0xf] %vm722_vm3, %v934_v12  ;;  %751 = vst.msk [vmem:[%s1180_s28 + $0x70] sm:$0xf] %vm722_vm3, %v950_v13  ;;  %v575_v18 = vmax.f32 %v487_v14, 0.0 }
  0xfb   : > { %v591_v19 = vmax.f32 %v551_v15, 0.0  ;;  %v937_v20 = vpack.c.bf16 %v577_v16, %v577_v16  ;;  %v953_v21 = vpack.c.bf16 %v593_v17, %v593_v17 }
  0xfc   : > { %v935_v23 = vpack.c.bf16 %v575_v18, %v575_v18 }
  0xfd   : > { %v951_v24 = vpack.c.bf16 %v591_v19, %v591_v19  ;;  %738 = vst.msk [vmem:[%s1180_s28 + $0x3c] sm:$0xf] %vm722_vm3, %v937_v20  ;;  %754 = vst.msk [vmem:[%s1180_s28 + $0x7c] sm:$0xf] %vm722_vm3, %v953_v21 }
  0xfe   : > { %736 = vst.msk [vmem:[%s1180_s28 + $0x34] sm:$0xf] %vm722_vm3, %v935_v23 }
  0xff   : > { %752 = vst.msk [vmem:[%s1180_s28 + $0x74] sm:$0xf] %vm722_vm3, %v951_v24 }
 0x100 PF: > { %s13_s14 = sadd.s32 1, %s1077_s14   ;;  %s1287_s12 = smov %s1073_s13 }
 0x101   : > { %p10_p5 = scmp.ge.s32.totalorder %s13_s14, 6   ;;  %s1288_s13 = smov %s1290_s15 }
 0x103   :  { %12 = sbr.rel (!%p10_p5) target bundleno = 2 (0x2), region = 62 }

</bundles_post_ra>
